<compile_context>
chip_gen: v7x
topology: tpu7x:2x2x1
jax: 0.10.0
libtpu: 0.0.40
codegen_flags: <defaults>
</compile_context>

<pallas_src>
import functools

import jax
import jax.numpy as jnp
from jax.experimental import pallas as pl
from jax.experimental.pallas import tpu as pltpu


# Total VMEM devoted to pipelined buffers (n_streams arrays x 2 buffers each).
# 24 MiB fits every generation's physical VMEM (v7x: 64 MiB, v5e/v6e: 128 MiB)
# with headroom, and is past the measured HBM-roofline knee for tile size.
_PIPELINE_VMEM_BUDGET = 24 * 1024 * 1024
# Scoped VMEM limit = pipeline budget + headroom.  Must be set explicitly so
# v5e (16 MiB default scoped limit) accepts the larger tiles.
_VMEM_LIMIT_BYTES = 32 * 1024 * 1024

# Encourage at least this many grid steps (megacore sharding on v7x) as long
# as each step moves at least _MIN_STEP_BYTES per array (keeps the ~0.35 us
# per-step overhead negligible).
_MIN_GRID_STEPS = 4
_MIN_STEP_BYTES = 512 * 1024

# Candidate lane-dense last dims (all multiples of 128 -> unmasked stores).
_LANE_CANDIDATES = (2048, 1024, 512, 256, 128)


# --------------------------------------------------------------------------
# Kernels
# --------------------------------------------------------------------------
def _recip_val_kernel(x_ref, val_ref, *, b):
    val_ref[...] = 1.0 / (x_ref[...] + b)


def _recip_val_jac_kernel(x_ref, val_ref, jac_ref, *, b):
    val = 1.0 / (x_ref[...] + b)
    val_ref[...] = val
    jac_ref[...] = -(val * val)


def _recip_val_kernel_dyn(b_ref, x_ref, val_ref):
    b = b_ref[0].astype(x_ref.dtype)
    val_ref[...] = 1.0 / (x_ref[...] + b)


def _recip_val_jac_kernel_dyn(b_ref, x_ref, val_ref, jac_ref):
    b = b_ref[0].astype(x_ref.dtype)
    val = 1.0 / (x_ref[...] + b)
    val_ref[...] = val
    jac_ref[...] = -(val * val)


# --------------------------------------------------------------------------
# Layout helpers
# --------------------------------------------------------------------------
def _sublane_for_dtype(dtype) -> int:
    # Minimum second-to-last tile granularity by element width (packing).
    itemsize = jnp.dtype(dtype).itemsize
    return {4: 8, 2: 16, 1: 32}.get(itemsize, 8)


def _choose_slab(total: int):
    """Pick (rows, lanes, pad_elems) for laying `total` elements into 2-D.

    Prefers the widest lane-dense last dim that divides `total` exactly
    (zero wrapper-side padding/slicing).  Row counts need NOT be
    sublane-aligned: tiles are sublane-aligned and the cdiv grid handles a
    partial last block.  Fallback picks the (lanes, pad) combo with minimal
    padding, preferring wider lanes on ties.
    """
    for lanes in _LANE_CANDIDATES:
        if total % lanes == 0:
            return total // lanes, lanes, 0
    best = None
    for lanes in _LANE_CANDIDATES:
        rows = pl.cdiv(total, lanes)
        pad = rows * lanes - total
        if best is None or pad < best[2]:
            best = (rows, lanes, pad)
    return best


# --------------------------------------------------------------------------
# Public wrapper
# --------------------------------------------------------------------------
def reciprocal_forward(x, b=0.0, *, jacobian: bool = False):
    """Pallas version of Reciprocal.forward.

    Returns val (same shape/dtype as x).  If jacobian=True, also returns the
    diagonal Jacobian -val**2 (same shape as x) -- the array payload of the
    module's JacType.DIAG Jacobian.

    `b` may be a Python number (folded statically into the kernel) or a
    JAX scalar/array (passed via SMEM scalar prefetch; no recompiles when it
    changes at runtime).
    """
    orig_shape = x.shape
    dtype = x.dtype
    total = x.size
    itemsize = jnp.dtype(dtype).itemsize
    sublane = _sublane_for_dtype(dtype)

    rows, lanes, pad = _choose_slab(total)
    b_is_static = isinstance(b, (int, float))

    x_flat = jnp.ravel(x)
    if pad:
        # Pad so (pad + b) is nonzero for a static b; the tail is discarded
        # either way, this just keeps intermediates finite for nan-checkers.
        pad_value = (1.0 - float(b)) if b_is_static else 1.0
        x_flat = jnp.pad(x_flat, (0, pad), constant_values=pad_value)
    x2d = x_flat.reshape(rows, lanes)

    n_streams = 3 if jacobian else 2
    slab_bytes = rows * lanes * itemsize

    # Block sized from the actual stream count (val-only path gets ~1.5x
    # bigger tiles than the val+jac path within the same VMEM budget).
    block_bytes = _PIPELINE_VMEM_BUDGET // (n_streams * 2)
    tile_rows = max(sublane, (block_bytes // (lanes * itemsize)) // sublane * sublane)

    # Keep >= _MIN_GRID_STEPS grid steps for mid/large inputs so the
    # "parallel" axis can shard across v7x's two TensorCores, as long as each
    # step still moves a healthy amount of data.
    if slab_bytes >= _MIN_GRID_STEPS * _MIN_STEP_BYTES:
        split_rows = pl.cdiv(pl.cdiv(rows, _MIN_GRID_STEPS), sublane) * sublane
        tile_rows = min(tile_rows, max(split_rows, sublane))

    tile_rows = min(tile_rows, rows)
    grid = (pl.cdiv(rows, tile_rows),)

    # index_map ignores any trailing scalar-prefetch refs.
    spec = pl.BlockSpec((tile_rows, lanes), lambda i, *_: (i, 0))

    if jacobian:
        out_shape = (
            jax.ShapeDtypeStruct((rows, lanes), dtype),
            jax.ShapeDtypeStruct((rows, lanes), dtype),
        )
        out_specs = (spec, spec)
        flops = 4 * total
    else:
        out_shape = jax.ShapeDtypeStruct((rows, lanes), dtype)
        out_specs = spec
        flops = 2 * total

    if b_is_static:
        kernel = functools.partial(
            _recip_val_jac_kernel if jacobian else _recip_val_kernel, b=float(b)
        )
        num_scalar_prefetch = 0
        call_args = (x2d,)
    else:
        kernel = _recip_val_jac_kernel_dyn if jacobian else _recip_val_kernel_dyn
        num_scalar_prefetch = 1
        b_arr = jnp.asarray(b, dtype=jnp.float32).reshape(1)
        call_args = (b_arr, x2d)

    outs = pl.pallas_call(
        kernel,
        out_shape=out_shape,
        grid_spec=pltpu.PrefetchScalarGridSpec(
            num_scalar_prefetch=num_scalar_prefetch,
            grid=grid,
            in_specs=[spec],
            out_specs=out_specs,
        ),
        compiler_params=pltpu.CompilerParams(
            dimension_semantics=("parallel",),
            vmem_limit_bytes=_VMEM_LIMIT_BYTES,
        ),
        cost_estimate=pl.CostEstimate(
            flops=flops,
            transcendentals=0,
            bytes_accessed=n_streams * slab_bytes,
        ),
    )(*call_args)

    def _unslab(y2d):
        y = y2d.reshape(-1)
        if pad:
            y = y[:total]
        return y.reshape(orig_shape)

    if jacobian:
        val2d, jac2d = outs
        # TODO(synk): JacType.DIAG tagging (torch.Tensor subclass) has no
        # Pallas equivalent; the returned array is the Jacobian's diagonal.
        return _unslab(val2d), _unslab(jac2d)
    return _unslab(outs)


if __name__ == "__main__":
    key = jax.random.PRNGKey(0)

    # NCHW-style input, small shape (2048 elems -> aligned, zero-pad path).
    x = jax.random.uniform(
        key, (2, 4, 16, 16), dtype=jnp.float32, minval=0.5, maxval=2.0
    )
    b = 0.1

    # Static-b, val + jacobian path.
    val, jac = reciprocal_forward(x, b=b, jacobian=True)
    jax.block_until_ready((val, jac))

    val_ref = 1.0 / (x + b)
    jac_ref = -(val_ref**2)
    assert val.shape == x.shape and jac.shape == x.shape
    assert jnp.allclose(val, val_ref, rtol=1e-5, atol=1e-6)
    assert jnp.allclose(jac, jac_ref, rtol=1e-5, atol=1e-6)

    # Static-b, val-only path (2-stream kernel, larger tiles).
    val_only = reciprocal_forward(x, b=b)
    jax.block_until_ready(val_only)
    assert jnp.allclose(val_only, val_ref, rtol=1e-5, atol=1e-6)

    # Runtime (traced) b -> SMEM scalar-prefetch path, no per-value recompile.
    val_dyn, jac_dyn = reciprocal_forward(x, b=jnp.float32(b), jacobian=True)
    jax.block_until_ready((val_dyn, jac_dyn))
    assert jnp.allclose(val_dyn, val_ref, rtol=1e-5, atol=1e-6)
    assert jnp.allclose(jac_dyn, jac_ref, rtol=1e-5, atol=1e-6)

    # Non-128-divisible element count -> exercises the minimal-pad fallback.
    key2 = jax.random.PRNGKey(1)
    y = jax.random.uniform(key2, (3, 5, 7), dtype=jnp.float32, minval=0.5, maxval=2.0)
    vy, jy = reciprocal_forward(y, b=b, jacobian=True)
    jax.block_until_ready((vy, jy))
    vy_ref = 1.0 / (y + b)
    assert jnp.allclose(vy, vy_ref, rtol=1e-5, atol=1e-6)
    assert jnp.allclose(jy, -(vy_ref**2), rtol=1e-5, atol=1e-6)

    # 128-divisible but row count not sublane-aligned -> new zero-pad path.
    key3 = jax.random.PRNGKey(2)
    z = jax.random.uniform(key3, (3, 128), dtype=jnp.float32, minval=0.5, maxval=2.0)
    vz = reciprocal_forward(z, b=b)
    jax.block_until_ready(vz)
    assert jnp.allclose(vz, 1.0 / (z + b), rtol=1e-5, atol=1e-6)

    print("KERNEL_OK")
</pallas_src>

<mosaic_0001>
module attributes {stable_mosaic.version = 11 : i64} {
  func.func @_recip_val_jac_kernel(%arg0: i32, %arg1: memref<1x2048xf32, #tpu.memory_space<vmem>>, %arg2: memref<1x2048xf32, #tpu.memory_space<vmem>>, %arg3: memref<1x2048xf32, #tpu.memory_space<vmem>>) attributes {dimension_semantics = [#tpu.dimension_semantics<parallel>], iteration_bounds = array<i64: 1>, scalar_prefetch = 0 : i64, scratch_operands = 0 : i64, tpu.core_type = #tpu.core_type<tc>, window_params = [{transform_indices = @transform_0, window_bounds = array<i64: 1, 2048>}, {transform_indices = @transform_1, window_bounds = array<i64: 1, 2048>}, {transform_indices = @transform_2, window_bounds = array<i64: 1, 2048>}]} {
    %c0 = arith.constant 0 : index
    %c0_0 = arith.constant 0 : index
    %0 = vector.load %arg1[%c0, %c0_0] : memref<1x2048xf32, #tpu.memory_space<vmem>>, vector<1x2048xf32>
    %cst = arith.constant 1.000000e-01 : f32
    %1 = vector.broadcast %cst : f32 to vector<1x2048xf32>
    %2 = arith.addf %0, %1 : vector<1x2048xf32>
    %cst_1 = arith.constant 1.000000e+00 : f32
    %3 = vector.broadcast %cst_1 : f32 to vector<1x2048xf32>
    %4 = arith.divf %3, %2 : vector<1x2048xf32>
    %c0_2 = arith.constant 0 : index
    %c0_3 = arith.constant 0 : index
    %5 = vector.load %arg2[%c0_2, %c0_3] : memref<1x2048xf32, #tpu.memory_space<vmem>>, vector<1x2048xf32>
    tpu.vector_store %arg2[%c0_2, %c0_3], %4 {strides = array<i32>} : memref<1x2048xf32, #tpu.memory_space<vmem>>, vector<1x2048xf32>,
    %6 = arith.mulf %4, %4 : vector<1x2048xf32>
    %cst_4 = arith.constant 0.000000e+00 : f32
    %7 = vector.broadcast %cst_4 : f32 to vector<1x2048xf32>
    %8 = arith.subf %7, %6 : vector<1x2048xf32>
    %c0_5 = arith.constant 0 : index
    %c0_6 = arith.constant 0 : index
    %9 = vector.load %arg3[%c0_5, %c0_6] : memref<1x2048xf32, #tpu.memory_space<vmem>>, vector<1x2048xf32>
    tpu.vector_store %arg3[%c0_5, %c0_6], %8 {strides = array<i32>} : memref<1x2048xf32, #tpu.memory_space<vmem>>, vector<1x2048xf32>,
    return
  }
  func.func @transform_0(%arg0: i32) -> (i32, i32) {
    %c0_i32 = arith.constant 0 : i32
    %c0_i32_0 = arith.constant 0 : i32
    return %arg0, %c0_i32 : i32, i32
  }
  func.func @transform_1(%arg0: i32) -> (i32, i32) {
    %c0_i32 = arith.constant 0 : i32
    %c0_i32_0 = arith.constant 0 : i32
    return %arg0, %c0_i32 : i32, i32
  }
  func.func @transform_2(%arg0: i32) -> (i32, i32) {
    %c0_i32 = arith.constant 0 : i32
    %c0_i32_0 = arith.constant 0 : i32
    return %arg0, %c0_i32 : i32, i32
  }
}

</mosaic_0001>

<bundles_post_ra>
// kernel: tpu_custom_call.1
= control target key start
LH: loop header
LB: loop body
LE: loop exit
PB: predicated region body
PF: predicated region fallthrough
CT: control target
= control target key end

     0   :  { %8 = vsyncpa [#allocation3], 0  ;;  %s202_s0 = inlined_call_operand.hbm [shape: f32[1,2048], index: 0, kind: input, shape index: {}]   ;;  %s203_s1 = inlined_call_operand.hbm [shape: f32[1,2048], index: 1, kind: output, shape index: {0}]   ;;  %s204_s2 = inlined_call_operand.hbm [shape: f32[1,2048], index: 2, kind: output, shape index: {1}]  }
   0x1   :  { %9 = vsyncpa [#allocation4], 0 }
   0x2   :  { %10 = vsyncpa [#allocation7], 0  ;;  %s148_s9 = smov [#allocation2]   ;;  %s76_s13 = scalar_lea.hbm %s202_s0, 256 }
   0x3   :  { %s17_s10 = sshll.u32 %s148_s9, 4  ;;  %p77_p0 = scmp.ne.s32.totalorder %s202_s0, %s76_s13  ;;  %s18_s10 = int_to_ptr.vmem [resolvable:$true] %s17_s10 }
   0x4   :  { %p80_p1 = scmp.lt.u32.totalorder %s76_s13, %s202_s0 }
   0x6   :  { %p82_p2 = pnand %p80_p1, %p77_p0 }
   0x8   :  { %85 = shalt.err (!%p82_p2)
}
   0x9   :  { %s86_s18 = scalar_lea.vmem %s18_s10, 256  ;;  %p91_p4 = scmp.lt.s32.totalorder %s18_s10, %s18_s10 }
   0xa   :  { %p87_p3 = scmp.ne.s32.totalorder %s18_s10, %s86_s18  ;;  %p92_p5 = scmp.lt.s32.totalorder %s86_s18, %s86_s18 }
   0xc   :  { %p93_p6 = por %p92_p5, %p91_p4 }
   0xe   :  { %p94_p7 = pnand %p93_p6, %p87_p3 }
  0x10   :  { %97 = shalt.err (!%p94_p7)
}
  0x11   :  { %20 = dma.hbm_to_vmem [thread:$0]  %s202_s0, 256, %s18_s10, [#allocation3]  }
  0x12   :  { %142 = dma.done.wait [#allocation3], 256  }
  0x13   :  { %143 = vsyncadd [#allocation3], 4294967040  ;;  %v24_v0 = vld [vmem:[#allocation2] sm:$0xff]  ;;  %v25_v1 = vld [vmem:[#allocation2 + $0x8] sm:$0xff]  ;;  %s149_s21 = smov [#allocation5]   ;;  %s150_s23 = smov [#allocation6]  }
  0x14   :  { %v26_v2 = vadd.f32 0.1, %v24_v0  ;;  %v27_v3 = vadd.f32 0.1, %v25_v1  ;;  %s46_s22 = sshll.u32 %s149_s21, 4  ;;  %s56_s24 = sshll.u32 %s150_s23, 4  ;;  %s47_s22 = int_to_ptr.vmem [resolvable:$true] %s46_s22  ;;  %s57_s24 = int_to_ptr.vmem [resolvable:$true] %s56_s24 }
  0x15   :  { %s98_s0 = scalar_lea.vmem %s47_s22, 256  ;;  %p103_p9 = scmp.lt.s32.totalorder %s47_s22, %s47_s22 }
  0x16   :  { %72 = vrcp.f32 %v26_v2  ;;  %p99_p8 = scmp.ne.s32.totalorder %s47_s22, %s98_s0  ;;  %p104_p10 = scmp.lt.s32.totalorder %s98_s0, %s98_s0 }
  0x17   :  { %74 = vrcp.f32 %v27_v3 }
  0x18   :  { %p105_p11 = por %p104_p10, %p103_p9 }
  0x1a   :  { %p106_p12 = pnand %p105_p11, %p99_p8 }
  0x20   :  { %v73_v4 = vpop.eup %72 }
  0x21   :  { %v75_v5 = vpop.eup %74  ;;  %32 = vst [vmem:[#allocation5] sm:$0xff] %v73_v4  ;;  %v34_v6 = vmul.f32 %v73_v4, %v73_v4 }
  0x22   :  { %33 = vst [vmem:[#allocation5 + $0x8] sm:$0xff] %v75_v5  ;;  %v35_v7 = vmul.f32 %v75_v5, %v75_v5 }
  0x23   :  { %v36_v8 = vsub.f32 0.0, %v34_v6 }
  0x24   :  { %109 = shalt.err (!%p106_p12)
}
  0x25   :  { %s110_s27 = scalar_lea.hbm %s203_s1, 256 }
  0x26   :  { %p111_p13 = scmp.ne.s32.totalorder %s203_s1, %s110_s27  ;;  %p114_p0 = scmp.lt.u32.totalorder %s110_s27, %s203_s1 }
  0x28   :  { %p116_p1 = pnand %p114_p0, %p111_p13 }
  0x2a   :  { %119 = shalt.err (!%p116_p1)
}
  0x2b   :  { %49 = dma.vmem_to_hbm [thread:$0]  %s47_s22, 256, %s203_s1, [#allocation4]   ;;  %v37_v9 = vsub.f32 0.0, %v35_v7  ;;  %38 = vst [vmem:[#allocation6] sm:$0xff] %v36_v8 }
  0x2c   :  { %s120_s6 = scalar_lea.vmem %s57_s24, 256  ;;  %p125_p3 = scmp.lt.s32.totalorder %s57_s24, %s57_s24 }
  0x2d   :  { %39 = vst [vmem:[#allocation6 + $0x8] sm:$0xff] %v37_v9  ;;  %p121_p2 = scmp.ne.s32.totalorder %s57_s24, %s120_s6  ;;  %p126_p4 = scmp.lt.s32.totalorder %s120_s6, %s120_s6 }
  0x2f   :  { %p127_p5 = por %p126_p4, %p125_p3 }
  0x31   :  { %p128_p6 = pnand %p127_p5, %p121_p2 }
  0x33   :  { %131 = shalt.err (!%p128_p6)
}
  0x34   :  { %s132_s9 = scalar_lea.hbm %s204_s2, 256 }
  0x35   :  { %p133_p7 = scmp.ne.s32.totalorder %s204_s2, %s132_s9  ;;  %p136_p8 = scmp.lt.u32.totalorder %s132_s9, %s204_s2 }
  0x37   :  { %p138_p9 = pnand %p136_p8, %p133_p7 }
  0x39   :  { %141 = shalt.err (!%p138_p9)
}
  0x3a   :  { %59 = dma.vmem_to_hbm [thread:$0]  %s57_s24, 256, %s204_s2, [#allocation7]  }
  0x3b   :  { %144 = dma.done.wait [#allocation4], 256  }
  0x3c   :  { %145 = vsyncadd [#allocation4], 4294967040 }
  0x3d   :  { %146 = dma.done.wait [#allocation7], 256  }
  0x3e   :  { %147 = vsyncadd [#allocation7], 4294967040 }
  0x3f   :  { %66 = vsyncpa [#allocation3], 1 }
  0x40   :  { %67 = vsyncpa [#allocation4], 1 }
  0x41   :  { %68 = vsyncpa [#allocation7], 1 }

</bundles_post_ra>
